<compile_context>
chip_gen: v5e
topology: v5e:2x2
jax: 0.10.0
libtpu: 0.0.40
codegen_flags: <defaults>
</compile_context>

<pallas_src>
import functools

import jax
import jax.numpy as jnp
from jax.experimental import pallas as pl
from jax.experimental.pallas import tpu as pltpu


def _round_up(x, m):
    return (x + m - 1) // m * m


def _choose_batch_tiling(B, batch_tile):
    """Pick (TB, grid) for the 1-D batch grid.

    Single-tile batches use TB == padded batch (block == full array, always a
    legal block shape).  Multi-tile batches round TB to 16 sublanes (bf16-safe)
    and force an even grid so v7x's two TensorCores both get grid steps.
    """
    B8 = _round_up(B, 8)
    if B8 <= batch_tile:
        return B8, 1
    grid = pl.cdiv(B8, batch_tile)
    if grid % 2:
        grid += 1                      # v7x: even step count -> both TCs busy
    TB = _round_up(pl.cdiv(B8, grid), 16)
    return TB, grid


def dueling_qnet_kernel(x_ref, w1_ref, b1_ref, w2_ref, b2_ref, wh_ref, bh_ref,
                        o_ref, *, action_size, out_width):
    x = x_ref[...]                                                   # (TB, 128) bf16

    # fc1 + ReLU : bf16 MXU inputs, f32 accumulate, f32 elementwise.
    h1 = jnp.dot(x, w1_ref[...],
                 preferred_element_type=jnp.float32) + b1_ref[...]
    h1 = jnp.maximum(h1, 0.0)                                        # (TB, 128) f32

    # fc2 + ReLU
    h2 = jnp.dot(h1.astype(jnp.bfloat16), w2_ref[...],
                 preferred_element_type=jnp.float32) + b2_ref[...]
    h2 = jnp.maximum(h2, 0.0)                                        # (TB, 128) f32

    # Fused head: column 0 = value, columns 1..A = advantages, rest exact zero.
    head = jnp.dot(h2.astype(jnp.bfloat16), wh_ref[...],
                   preferred_element_type=jnp.float32) + bh_ref[...]  # (TB, 128)

    v = head[:, 0:1]                                                 # (TB, 1)

    # Padded head columns are exact zeros (pack_params invariant), so the
    # advantage sum is the row sum minus the value column. No iota/mask needed.
    a_sum = jnp.sum(head, axis=1, keepdims=True) - v                 # (TB, 1)
    a_mean = a_sum * (1.0 / action_size)

    # Dueling combine. NOTE: stored column 0 is 2V - mean(A) (don't-care); the
    # wrapper only consumes columns 1..A.  Narrow store -> small HBM writeback.
    q = v + (head - a_mean)                                          # (TB, 128)
    o_ref[...] = q[:, :out_width]                                    # (TB, OUT_W)


def qnet_dueling_forward(state, params, *, batch_tile=1024):
    """state: (B, state_size) f32.  params: output of pack_params()."""
    B, S = state.shape
    A = params["action_size"]
    S_pad, F1 = params["w1"].shape
    F2 = params["w2"].shape[1]
    H = params["wh"].shape[1]                     # padded head width (128)
    OUT_W = _round_up(1 + A, 8)                   # narrow output slab width

    TB, grid = _choose_batch_tiling(B, batch_tile)
    B_pad = TB * grid

    # Cast + (only-if-needed) pad in one fused pre-pass (bf16 halves the bytes).
    x = state.astype(jnp.bfloat16)
    if B_pad != B or S_pad != S:
        x = jnp.pad(x, ((0, B_pad - B), (0, S_pad - S)))

    out = pl.pallas_call(
        functools.partial(dueling_qnet_kernel, action_size=A, out_width=OUT_W),
        out_shape=jax.ShapeDtypeStruct((B_pad, OUT_W), jnp.float32),
        grid=(grid,),
        in_specs=[
            pl.BlockSpec((TB, S_pad), lambda i: (i, 0)),   # activations: batch-tiled
            pl.BlockSpec((S_pad, F1), lambda i: (0, 0)),   # weights: full-block, resident
            pl.BlockSpec((1, F1), lambda i: (0, 0)),
            pl.BlockSpec((F1, F2), lambda i: (0, 0)),
            pl.BlockSpec((1, F2), lambda i: (0, 0)),
            pl.BlockSpec((F2, H), lambda i: (0, 0)),
            pl.BlockSpec((1, H), lambda i: (0, 0)),
        ],
        out_specs=pl.BlockSpec((TB, OUT_W), lambda i: (i, 0)),
        compiler_params=pltpu.CompilerParams(
            dimension_semantics=("parallel",)),
    )(x, params["w1"], params["b1"], params["w2"], params["b2"],
      params["wh"], params["bh"])

    # Columns 1..A of the narrow slab are the Q-values; drop batch padding too.
    return out[:B, 1:1 + A]


def init_params(key, state_size, action_size, fc1_units=64, fc2_units=128):
    """Unpadded f32 params mimicking PyTorch nn.Linear default init."""
    def linear(k, fan_in, fan_out):
        kw, kb = jax.random.split(k)
        bound = 1.0 / jnp.sqrt(fan_in)
        w = jax.random.uniform(kw, (fan_in, fan_out), jnp.float32, -bound, bound)
        b = jax.random.uniform(kb, (fan_out,), jnp.float32, -bound, bound)
        return w, b

    k1, k2, k3, k4 = jax.random.split(key, 4)
    w1, b1 = linear(k1, state_size, fc1_units)
    w2, b2 = linear(k2, fc1_units, fc2_units)
    wv, bv = linear(k3, fc2_units, 1)
    wa, ba = linear(k4, fc2_units, action_size)
    return dict(w1=w1, b1=b1, w2=w2, b2=b2, wv=wv, bv=bv, wa=wa, ba=ba)


def pack_params(p, *, lane=128):
    """Pad to lane width, fuse the two heads, cast weights to bf16.

    INVARIANT (relied on by the kernel's mask-free dueling mean): every padded
    column of `wh` / entry of `bh` beyond the first 1+A columns is EXACTLY 0,
    so the corresponding head columns are exactly 0 after the matmul + bias.
    """
    state_size, fc1 = p["w1"].shape
    fc2 = p["w2"].shape[1]
    A = p["wa"].shape[1]

    S_pad = _round_up(state_size, lane)
    F1_pad = _round_up(fc1, lane)
    F2_pad = _round_up(fc2, lane)
    H_pad = _round_up(1 + A, lane)

    w1 = jnp.pad(p["w1"], ((0, S_pad - state_size), (0, F1_pad - fc1)))
    b1 = jnp.pad(p["b1"], (0, F1_pad - fc1)).reshape(1, F1_pad)
    w2 = jnp.pad(p["w2"], ((0, F1_pad - fc1), (0, F2_pad - fc2)))
    b2 = jnp.pad(p["b2"], (0, F2_pad - fc2)).reshape(1, F2_pad)

    # Fused head layout: [ value | advantages | zero pad ]
    wh = jnp.concatenate([p["wv"], p["wa"]], axis=1)                  # (fc2, 1+A)
    bh = jnp.concatenate([p["bv"], p["ba"]], axis=0)                  # (1+A,)
    wh = jnp.pad(wh, ((0, F2_pad - fc2), (0, H_pad - (1 + A))))
    bh = jnp.pad(bh, (0, H_pad - (1 + A))).reshape(1, H_pad)

    return dict(
        w1=w1.astype(jnp.bfloat16), b1=b1,
        w2=w2.astype(jnp.bfloat16), b2=b2,
        wh=wh.astype(jnp.bfloat16), bh=bh,
        action_size=A,
    )


def reference_forward(state, p, *, cast=None):
    """Pure-JAX reference mirroring the PyTorch forward.

    cast=jnp.bfloat16 mimics the kernel's bf16-input / f32-accumulate matmuls.
    """
    def mm(x, w):
        if cast is not None:
            return jnp.dot(x.astype(cast), w.astype(cast),
                           preferred_element_type=jnp.float32)
        return jnp.dot(x, w)

    h1 = jnp.maximum(mm(state, p["w1"]) + p["b1"], 0.0)
    h2 = jnp.maximum(mm(h1, p["w2"]) + p["b2"], 0.0)
    v = mm(h2, p["wv"]) + p["bv"]
    a = mm(h2, p["wa"]) + p["ba"]
    return v + (a - a.mean(axis=1, keepdims=True))


if __name__ == "__main__":
    key = jax.random.PRNGKey(0)
    k_params, k_state = jax.random.split(key)

    batch = 8
    state_size = 37      # Banana env observation size
    action_size = 4
    fc1_units, fc2_units = 64, 128

    raw = init_params(k_params, state_size, action_size, fc1_units, fc2_units)
    params = pack_params(raw)
    state = jax.random.normal(k_state, (batch, state_size), dtype=jnp.float32)

    # Jit the wrapper so the bf16 cast + pad pre-pass fuses into one XLA op.
    fwd = jax.jit(lambda s: qnet_dueling_forward(s, params))
    q = jax.block_until_ready(fwd(state))

    q_bf16 = reference_forward(state, raw, cast=jnp.bfloat16)  # same precision path
    q_f32 = reference_forward(state, raw)                      # full f32 semantics

    assert q.shape == (batch, action_size)
    assert jnp.allclose(q, q_bf16, atol=2e-3, rtol=2e-3), "mismatch vs bf16 reference"
    assert jnp.allclose(q, q_f32, atol=5e-2, rtol=5e-2), "mismatch vs f32 reference"

    print("KERNEL_OK")
</pallas_src>

<mosaic_0001>
module attributes {stable_mosaic.version = 11 : i64} {
  func.func @dueling_qnet_kernel(%arg0: i32, %arg1: memref<8x128xbf16, #tpu.memory_space<vmem>>, %arg2: memref<128x128xbf16, #tpu.memory_space<vmem>>, %arg3: memref<1x128xf32, #tpu.memory_space<vmem>>, %arg4: memref<128x128xbf16, #tpu.memory_space<vmem>>, %arg5: memref<1x128xf32, #tpu.memory_space<vmem>>, %arg6: memref<128x128xbf16, #tpu.memory_space<vmem>>, %arg7: memref<1x128xf32, #tpu.memory_space<vmem>>, %arg8: memref<8x8xf32, #tpu.memory_space<vmem>>) attributes {dimension_semantics = [#tpu.dimension_semantics<parallel>], iteration_bounds = array<i64: 1>, scalar_prefetch = 0 : i64, scratch_operands = 0 : i64, tpu.core_type = #tpu.core_type<tc>, window_params = [{transform_indices = @transform_0, window_bounds = array<i64: 8, 128>}, {pipeline_mode = #tpu.pipeline_mode<synchronous>, transform_indices = @transform_1, window_bounds = array<i64: 128, 128>}, {pipeline_mode = #tpu.pipeline_mode<synchronous>, transform_indices = @transform_2, window_bounds = array<i64: 1, 128>}, {pipeline_mode = #tpu.pipeline_mode<synchronous>, transform_indices = @transform_3, window_bounds = array<i64: 128, 128>}, {pipeline_mode = #tpu.pipeline_mode<synchronous>, transform_indices = @transform_4, window_bounds = array<i64: 1, 128>}, {pipeline_mode = #tpu.pipeline_mode<synchronous>, transform_indices = @transform_5, window_bounds = array<i64: 128, 128>}, {pipeline_mode = #tpu.pipeline_mode<synchronous>, transform_indices = @transform_6, window_bounds = array<i64: 1, 128>}, {transform_indices = @transform_7, window_bounds = array<i64: 8, 8>}]} {
    %c0 = arith.constant 0 : index
    %c0_0 = arith.constant 0 : index
    %0 = vector.load %arg1[%c0, %c0_0] : memref<8x128xbf16, #tpu.memory_space<vmem>>, vector<8x128xbf16>
    %c0_1 = arith.constant 0 : index
    %c0_2 = arith.constant 0 : index
    %1 = vector.load %arg2[%c0_1, %c0_2] : memref<128x128xbf16, #tpu.memory_space<vmem>>, vector<128x128xbf16>
    %cst = arith.constant dense<0.000000e+00> : vector<8x128xf32>
    %2 = tpu.matmul %0, %1, %cst {dimension_numbers = #tpu.dot_dimension_numbers<[1], [0], [0], [1], [0, 0, 1, 1], [], []>} : vector<8x128xbf16>, vector<128x128xbf16>, vector<8x128xf32> -> vector<8x128xf32>
    %c0_3 = arith.constant 0 : index
    %c0_4 = arith.constant 0 : index
    %3 = vector.load %arg3[%c0_3, %c0_4] : memref<1x128xf32, #tpu.memory_space<vmem>>, vector<1x128xf32>
    %4 = vector.broadcast %3 : vector<1x128xf32> to vector<8x128xf32>
    %5 = arith.addf %2, %4 : vector<8x128xf32>
    %cst_5 = arith.constant 0.000000e+00 : f32
    %6 = vector.broadcast %cst_5 : f32 to vector<8x128xf32>
    %7 = arith.maximumf %5, %6 : vector<8x128xf32>
    %8 = arith.truncf %7 : vector<8x128xf32> to vector<8x128xbf16>
    %c0_6 = arith.constant 0 : index
    %c0_7 = arith.constant 0 : index
    %9 = vector.load %arg4[%c0_6, %c0_7] : memref<128x128xbf16, #tpu.memory_space<vmem>>, vector<128x128xbf16>
    %cst_8 = arith.constant dense<0.000000e+00> : vector<8x128xf32>
    %10 = tpu.matmul %8, %9, %cst_8 {dimension_numbers = #tpu.dot_dimension_numbers<[1], [0], [0], [1], [0, 0, 1, 1], [], []>} : vector<8x128xbf16>, vector<128x128xbf16>, vector<8x128xf32> -> vector<8x128xf32>
    %c0_9 = arith.constant 0 : index
    %c0_10 = arith.constant 0 : index
    %11 = vector.load %arg5[%c0_9, %c0_10] : memref<1x128xf32, #tpu.memory_space<vmem>>, vector<1x128xf32>
    %12 = vector.broadcast %11 : vector<1x128xf32> to vector<8x128xf32>
    %13 = arith.addf %10, %12 : vector<8x128xf32>
    %cst_11 = arith.constant 0.000000e+00 : f32
    %14 = vector.broadcast %cst_11 : f32 to vector<8x128xf32>
    %15 = arith.maximumf %13, %14 : vector<8x128xf32>
    %16 = arith.truncf %15 : vector<8x128xf32> to vector<8x128xbf16>
    %c0_12 = arith.constant 0 : index
    %c0_13 = arith.constant 0 : index
    %17 = vector.load %arg6[%c0_12, %c0_13] : memref<128x128xbf16, #tpu.memory_space<vmem>>, vector<128x128xbf16>
    %cst_14 = arith.constant dense<0.000000e+00> : vector<8x128xf32>
    %18 = tpu.matmul %16, %17, %cst_14 {dimension_numbers = #tpu.dot_dimension_numbers<[1], [0], [0], [1], [0, 0, 1, 1], [], []>} : vector<8x128xbf16>, vector<128x128xbf16>, vector<8x128xf32> -> vector<8x128xf32>
    %c0_15 = arith.constant 0 : index
    %c0_16 = arith.constant 0 : index
    %19 = vector.load %arg7[%c0_15, %c0_16] : memref<1x128xf32, #tpu.memory_space<vmem>>, vector<1x128xf32>
    %20 = vector.broadcast %19 : vector<1x128xf32> to vector<8x128xf32>
    %21 = arith.addf %18, %20 : vector<8x128xf32>
    %22 = vector.extract_strided_slice %21 {offsets = [0, 0], sizes = [8, 1], strides = [1, 1]} : vector<8x128xf32> to vector<8x1xf32>
    %cst_17 = arith.constant dense<0.000000e+00> : vector<8xf32>
    %23 = vector.multi_reduction <add>, %21, %cst_17 [1] : vector<8x128xf32> to vector<8xf32>
    %24 = vector.shape_cast %23 : vector<8xf32> to vector<8x1xf32>
    %25 = arith.subf %24, %22 : vector<8x1xf32>
    %cst_18 = arith.constant 2.500000e-01 : f32
    %26 = vector.broadcast %cst_18 : f32 to vector<8x1xf32>
    %27 = arith.mulf %25, %26 : vector<8x1xf32>
    %28 = vector.broadcast %27 : vector<8x1xf32> to vector<8x128xf32>
    %29 = arith.subf %21, %28 : vector<8x128xf32>
    %30 = vector.broadcast %22 : vector<8x1xf32> to vector<8x128xf32>
    %31 = arith.addf %30, %29 : vector<8x128xf32>
    %32 = vector.extract_strided_slice %31 {offsets = [0, 0], sizes = [8, 8], strides = [1, 1]} : vector<8x128xf32> to vector<8x8xf32>
    %c0_19 = arith.constant 0 : index
    %c0_20 = arith.constant 0 : index
    %33 = vector.load %arg8[%c0_19, %c0_20] : memref<8x8xf32, #tpu.memory_space<vmem>>, vector<8x8xf32>
    tpu.vector_store %arg8[%c0_19, %c0_20], %32 {strides = array<i32>} : memref<8x8xf32, #tpu.memory_space<vmem>>, vector<8x8xf32>,
    return
  }
  func.func @transform_0(%arg0: i32) -> (i32, i32) {
    %c0_i32 = arith.constant 0 : i32
    %c0_i32_0 = arith.constant 0 : i32
    return %arg0, %c0_i32 : i32, i32
  }
  func.func @transform_1(%arg0: i32) -> (i32, i32) {
    %c0_i32 = arith.constant 0 : i32
    %c0_i32_0 = arith.constant 0 : i32
    %c0_i32_1 = arith.constant 0 : i32
    return %c0_i32, %c0_i32_0 : i32, i32
  }
  func.func @transform_2(%arg0: i32) -> (i32, i32) {
    %c0_i32 = arith.constant 0 : i32
    %c0_i32_0 = arith.constant 0 : i32
    %c0_i32_1 = arith.constant 0 : i32
    return %c0_i32, %c0_i32_0 : i32, i32
  }
  func.func @transform_3(%arg0: i32) -> (i32, i32) {
    %c0_i32 = arith.constant 0 : i32
    %c0_i32_0 = arith.constant 0 : i32
    %c0_i32_1 = arith.constant 0 : i32
    return %c0_i32, %c0_i32_0 : i32, i32
  }
  func.func @transform_4(%arg0: i32) -> (i32, i32) {
    %c0_i32 = arith.constant 0 : i32
    %c0_i32_0 = arith.constant 0 : i32
    %c0_i32_1 = arith.constant 0 : i32
    return %c0_i32, %c0_i32_0 : i32, i32
  }
  func.func @transform_5(%arg0: i32) -> (i32, i32) {
    %c0_i32 = arith.constant 0 : i32
    %c0_i32_0 = arith.constant 0 : i32
    %c0_i32_1 = arith.constant 0 : i32
    return %c0_i32, %c0_i32_0 : i32, i32
  }
  func.func @transform_6(%arg0: i32) -> (i32, i32) {
    %c0_i32 = arith.constant 0 : i32
    %c0_i32_0 = arith.constant 0 : i32
    %c0_i32_1 = arith.constant 0 : i32
    return %c0_i32, %c0_i32_0 : i32, i32
  }
  func.func @transform_7(%arg0: i32) -> (i32, i32) {
    %c0_i32 = arith.constant 0 : i32
    %c0_i32_0 = arith.constant 0 : i32
    return %arg0, %c0_i32 : i32, i32
  }
}

</mosaic_0001>

<bundles_post_ra>
// kernel: _lambda_.1
= control target key start
LH: loop header
LB: loop body
LE: loop exit
PB: predicated region body
PF: predicated region fallthrough
CT: control target
= control target key end

     0   :  { %12 = vsyncpa [#allocation3], 0  ;;  %s622_s0 = inlined_call_operand.vmem [shape: bf16[8,128], index: 0, kind: input, shape index: {}]   ;;  %s623_s1 = inlined_call_operand.hbm [shape: bf16[128,128], index: 1, kind: input, shape index: {}]   ;;  %s624_s2 = inlined_call_operand.vmem [shape: f32[1,128], index: 2, kind: input, shape index: {}]   ;;  %s625_s3 = inlined_call_operand.hbm [shape: bf16[128,128], index: 3, kind: input, shape index: {}]   ;;  %s626_s4 = inlined_call_operand.vmem [shape: f32[1,128], index: 4, kind: input, shape index: {}]   ;;  %s627_s5 = inlined_call_operand.hbm [shape: bf16[128,128], index: 5, kind: input, shape index: {}]   ;;  %s628_s6 = inlined_call_operand.vmem [shape: f32[1,128], index: 6, kind: input, shape index: {}]   ;;  %s629_s7 = inlined_call_operand.vmem [shape: f32[8,8], index: 7, kind: output, shape index: {}]  }
   0x1   :  { %13 = vsyncpa [#allocation5], 0  ;;  %s35_s26 = sshll.u32 %s625_s3, 4  ;;  %s552_s27 = smov [#allocation4]   ;;  %s36_s26 = int_to_ptr.hbm [resolvable:$true] %s35_s26 }
   0x2   :  { %s37_s28 = sshll.u32 %s552_s27, 4  ;;  %s20_s8 = sshll.u32 %s623_s1, 4  ;;  %s38_s28 = int_to_ptr.vmem [resolvable:$true] %s37_s28  ;;  %s21_s8 = int_to_ptr.hbm [resolvable:$true] %s20_s8 }
   0x3   :  { %s553_s9 = smov 64   ;;  %s554_s10 = smov 4  }
   0x4   :  { %43 = dma.hbm_to_vmem [thread:$0]  %s36_s26, 1024, %s38_s28, [#allocation5], %s553_s9, %s553_s9, %s554_s10  }
   0x5   :  { %s555_s11 = smov [#allocation2]   ;;  %s50_s15 = sshll.u32 %s627_s5, 4  ;;  %s51_s15 = int_to_ptr.hbm [resolvable:$true] %s50_s15 }
   0x6   :  { %s22_s12 = sshll.u32 %s555_s11, 4  ;;  %s556_s3 = smov [#allocation6]   ;;  %s23_s12 = int_to_ptr.vmem [resolvable:$true] %s22_s12 }
   0x7   :  { %28 = dma.hbm_to_vmem [thread:$0]  %s21_s8, 1024, %s23_s12, [#allocation3], %s553_s9, %s553_s9, %s554_s10  }
   0x8   :  { %s52_s16 = sshll.u32 %s556_s3, 4  ;;  %s53_s16 = int_to_ptr.vmem [resolvable:$true] %s52_s16 }
   0x9   :  { %58 = dma.hbm_to_vmem [thread:$0]  %s51_s15, 1024, %s53_s16, [#allocation5], %s553_s9, %s553_s9, %s554_s10  }
   0xa   :  { %548 = dma.done.wait [#allocation3], 1024  }
   0xb   :  { %549 = vsyncadd [#allocation3], 4294966272 }
   0xc   :  { %550 = dma.done.wait [#allocation5], 2048  }
   0xd   :  { %551 = vsyncadd [#allocation5], 4294965248  ;;  %v448_v0 = vld [vmem:[#allocation2 + $0x38] sm:$0xff]  ;;  %v447_v1 = vld [vmem:[#allocation2 + $0x30] sm:$0xff]  ;;  %v557_v37 = vmov 0   ;;  %vm337_vm0 = vcmask 64512  }
   0xe   :  { %142 = vmatpush.bf16.msra.mxu0 %v448_v0  ;;  %v456_v2 = vld [vmem:[#allocation4 + $0x38] sm:$0xff]  ;;  %v455_v3 = vld [vmem:[#allocation4 + $0x30] sm:$0xff]  ;;  %v446_v4 = vld [vmem:[#allocation2 + $0x28] sm:$0xff]  ;;  %472 = vset.pattern.permute.xlu1 %v557_v37 }
   0xf   :  { %225 = vmatpush.bf16.msra.mxu1 %v456_v2  ;;  %v454_v5 = vld [vmem:[#allocation4 + $0x28] sm:$0xff]  ;;  %v445_v6 = vld [vmem:[#allocation2 + $0x20] sm:$0xff]  ;;  %v444_v8 = vld [vmem:[#allocation2 + $0x18] sm:$0xff]  ;;  %471 = vset.pattern.permute.xlu0 %v557_v37 }
  0x10   :  { %v453_v7 = vld [vmem:[#allocation4 + $0x20] sm:$0xff]  ;;  %v452_v9 = vld [vmem:[#allocation4 + $0x18] sm:$0xff]  ;;  %v443_v10 = vld [vmem:[#allocation2 + $0x10] sm:$0xff] }
  0x11   :  { %v451_v11 = vld [vmem:[#allocation4 + $0x10] sm:$0xff]  ;;  %v442_v12 = vld [vmem:[#allocation2 + $0x8] sm:$0xff]  ;;  %v441_v13 = vld [vmem:[#allocation2] sm:$0xff] }
  0x12   :  { %143 = vmatpush.bf16.msra.mxu0 %v447_v1  ;;  %v73_v14 = vld [vmem:[%s622_s0] sm:$0xf]  ;;  %v450_v15 = vld [vmem:[#allocation4 + $0x8] sm:$0xff]  ;;  %v464_v17 = vld [vmem:[#allocation6 + $0x38] sm:$0xff] }
  0x13   :  { %226 = vmatpush.bf16.msra.mxu1 %v455_v3  ;;  %v449_v16 = vld [vmem:[#allocation4] sm:$0xff]  ;;  %308 = vmatpush.bf16.msra.mxu2 %v464_v17  ;;  %v463_v18 = vld [vmem:[#allocation6 + $0x30] sm:$0xff]  ;;  %v462_v19 = vld [vmem:[#allocation6 + $0x28] sm:$0xff] }
  0x14   :  { %v461_v20 = vld [vmem:[#allocation6 + $0x20] sm:$0xff]  ;;  %v460_v21 = vld [vmem:[#allocation6 + $0x18] sm:$0xff]  ;;  %v459_v22 = vld [vmem:[#allocation6 + $0x10] sm:$0xff] }
  0x15   :  { %v473_v23 = vld [vmem:[%s624_s2] ss:$0 sm:$0xff]  ;;  %v458_v29 = vld [vmem:[#allocation6 + $0x8] sm:$0xff] }
  0x16   :  { %144 = vmatpush.bf16.msra.mxu0 %v446_v4  ;;  %v457_v30 = vld [vmem:[#allocation6] sm:$0xff] }
  0x17   :  { %227 = vmatpush.bf16.msra.mxu1 %v454_v5  ;;  %309 = vmatpush.bf16.msra.mxu2 %v463_v18  ;;  %v474_v31 = vld [vmem:[%s626_s4] ss:$0 sm:$0xff] }
  0x18   :  { %v475_v38 = vld [vmem:[%s628_s6] ss:$0 sm:$0xff] }
  0x1a   :  { %145 = vmatpush.bf16.msra.mxu0 %v445_v6 }
  0x1b   :  { %228 = vmatpush.bf16.msra.mxu1 %v453_v7  ;;  %310 = vmatpush.bf16.msra.mxu2 %v462_v19 }
  0x1e   :  { %146 = vmatpush.bf16.msra.mxu0 %v444_v8 }
  0x1f   :  { %229 = vmatpush.bf16.msra.mxu1 %v452_v9  ;;  %311 = vmatpush.bf16.msra.mxu2 %v461_v20 }
  0x22   :  { %147 = vmatpush.bf16.msra.mxu0 %v443_v10 }
  0x23   :  { %230 = vmatpush.bf16.msra.mxu1 %v451_v11  ;;  %312 = vmatpush.bf16.msra.mxu2 %v460_v21 }
  0x26   :  { %148 = vmatpush.bf16.msra.mxu0 %v442_v12 }
  0x27   :  { %231 = vmatpush.bf16.msra.mxu1 %v450_v15  ;;  %313 = vmatpush.bf16.msra.mxu2 %v459_v22 }
  0x2a   :  { %149 = vmatpush.bf16.msra.mxu0 %v441_v13 }
  0x2b   :  { %232 = vmatpush.bf16.msra.mxu1 %v449_v16  ;;  %314 = vmatpush.bf16.msra.mxu2 %v458_v29 }
  0x2d   :  { %150 = vmatmul.bf16.vlgmr.msra.gmra.mxu0 %v73_v14 }
  0x2f   :  { %315 = vmatpush.bf16.msra.mxu2 %v457_v30 }
  0xaa   :  { %v151_v24 = vpop.f32.mrf.mxu0 }
  0xab   :  { %v152_v25 = vadd.f32 %v473_v23, %v151_v24 }
  0xad   :  { %v155_v26 = vmax.f32 %v152_v25, 0.0 }
  0xaf   :  { %v156_v27 = vpack.c.bf16 %v155_v26, %v155_v26 }
  0xb1   :  { %233 = vmatmul.bf16.vlgmr.msra.gmra.mxu1 %v156_v27 }
  0xb2   :  { %v153_v28 = vpop.f32.mrf.mxu0 }
 0x12e   :  { %v234_v32 = vpop.f32.mrf.mxu1 }
 0x12f   :  { %v235_v33 = vadd.f32 %v474_v31, %v234_v32 }
 0x131   :  { %v238_v34 = vmax.f32 %v235_v33, 0.0 }
 0x133   :  { %v239_v35 = vpack.c.bf16 %v238_v34, %v238_v34 }
 0x135   :  { %316 = vmatmul.bf16.vlgmr.msra.gmra.mxu2 %v239_v35 }
 0x136   :  { %v236_v36 = vpop.f32.mrf.mxu1 }
 0x1b8   :  { %v317_v39 = vpop.f32.mrf.mxu2 }
 0x1b9   :  { %v318_v40 = vadd.f32 %v475_v38, %v317_v39 }
 0x1bb   :  { %333 = vperm.xlu1 %472, %v318_v40   ;;  %321 = vadd.xlane.f32.xlu0 %v318_v40 }
 0x1c0   :  { %v319_v41 = vpop.f32.mrf.mxu2 }
 0x22d   :  { %v334_v47 = vpop.permute.xlu1 %333 }
 0x22e   :  { %v322_v42 = vpop.xlane.xlu0 %321 }
 0x22f   :  { %v323_v43 = vsub.f32 %v322_v42, %v318_v40 }
 0x231   :  { %v324_v44 = vmul.f32 0.25, %v323_v43 }
 0x233   :  { %327 = vperm.xlu0 %471, %v324_v44  }
 0x2a5   :  { %v328_v45 = vpop.permute.xlu0 %327 }
 0x2a6   :  { %v330_v46 = vsub.f32 %v318_v40, %v328_v45 }
 0x2a8   :  { %v336_v48 = vadd.f32 %v334_v47, %v330_v46 }
 0x2aa   :  { %338 = vst.msk [vmem:[%s629_s7] sm:$0xff] %vm337_vm0, %v336_v48 }
 0x2ab   :  { %343 = vsyncpa [#allocation3], 1 }
 0x2ac   :  { %344 = vsyncpa [#allocation5], 1 }

</bundles_post_ra>
